<compile_context>
chip_gen: v5e
topology: v5e:2x2
jax: 0.10.0
libtpu: 0.0.40
codegen_flags: <defaults>
</compile_context>

<pallas_src>
import functools

import jax
import jax.numpy as jnp
from jax.experimental import pallas as pl
from jax.experimental.pallas import tpu as pltpu


def _round_up(x: int, m: int) -> int:
    return ((x + m - 1) // m) * m


def _gather_dma_kernel(idx_ref, tx_hbm, out_ref, sems, *, bt, batch):
    """Gather `bt` selected rows of t_x straight into the output tile.

    idx_ref: SMEM (B,) int32  -- argmax position per batch element (prefetch)
    tx_hbm:  HBM  (B, L, D)   -- full feature tensor (no auto-DMA)
    out_ref: VMEM (bt, D)     -- pipelined output tile; DMA destination
    sems:    DMA semaphores, one per row copy
    """
    base = pl.program_id(0) * bt
    copies = []
    # Issue every row DMA first (all scalar reads happen before any .wait(),
    # so all bt copies are in flight together), then wait on all of them.
    for i in range(bt):  # static unroll
        # Clamp so the padded tail of the last batch tile stays in bounds;
        # the duplicated rows are clipped by the pipeline writeback.
        b = jnp.minimum(base + i, batch - 1)
        row = idx_ref[b]
        cp = pltpu.make_async_copy(
            tx_hbm.at[b, pl.ds(row, 1), :],   # (1, D) selected row in HBM
            out_ref.at[pl.ds(i, 1), :],       # (1, D) row of the output tile
            sems.at[i],
        )
        cp.start()
        copies.append(cp)
    for cp in copies:
        cp.wait()


def _gather_vmem_kernel(idx_ref, tx_ref, out_ref, *, bt, batch):
    """Small-row fallback: gather from an auto-pipelined (bt, L, D) VMEM tile.

    idx_ref: SMEM (B,) int32  -- argmax position per batch element (prefetch)
    tx_ref:  VMEM (bt, L, D)  -- this batch tile's features (auto-DMA)
    out_ref: VMEM (bt, D)     -- output tile
    """
    base = pl.program_id(0) * bt
    for i in range(bt):  # static unroll (bt <= 8 on this path)
        b = jnp.minimum(base + i, batch - 1)
        row = idx_ref[b]
        out_ref[pl.ds(i, 1), :] = tx_ref[i, pl.ds(row, 1), :]


def text_prompt_forward(t_x: jax.Array, text: jax.Array, *, block_b: int = 32) -> jax.Array:
    """t_x: [B, L, D] float, text: [B, L] int -> [B, D] float."""
    B, L, D = t_x.shape
    assert text.shape == (B, L)

    # Trivial [B, L] reduction done by XLA; only B int32s reach the kernel.
    # First-max tie-breaking matches torch.argmax(dim=-1).
    idx = jnp.argmax(text, axis=-1).astype(jnp.int32)

    itemsize = jnp.dtype(t_x.dtype).itemsize
    row_bytes = D * itemsize
    small_tile_bytes = min(B, 8) * L * row_bytes
    use_dma = (row_bytes >= 512) or (small_tile_bytes > (4 << 20))

    if use_dma:
        # Batch tile: multiple of 8, big enough to amortize per-step pipeline
        # overhead and keep many row DMAs in flight, but with >= 2 grid steps
        # when B > 8 so both v7x TensorCores get work.
        if B <= 8:
            bt = B
        else:
            bt = min(block_b, _round_up(pl.cdiv(B, 2), 8))
        grid = (pl.cdiv(B, bt),)
        kernel = functools.partial(_gather_dma_kernel, bt=bt, batch=B)
        return pl.pallas_call(
            kernel,
            out_shape=jax.ShapeDtypeStruct((B, D), t_x.dtype),
            grid_spec=pltpu.PrefetchScalarGridSpec(
                num_scalar_prefetch=1,
                grid=grid,
                in_specs=[pl.BlockSpec(memory_space=pl.ANY)],  # t_x stays in HBM
                out_specs=pl.BlockSpec((bt, D), lambda g, idx_ref: (g, 0)),
                scratch_shapes=[pltpu.SemaphoreType.DMA((bt,))],
            ),
            compiler_params=pltpu.CompilerParams(
                dimension_semantics=("parallel",),
            ),
        )(idx, t_x)

    # Small rows: read the (bt, L, D) tile through the normal pipeline and
    # slice the selected row out in VMEM instead of issuing tiny DMAs.
    bt = min(B, 8)
    grid = (pl.cdiv(B, bt),)
    kernel = functools.partial(_gather_vmem_kernel, bt=bt, batch=B)
    return pl.pallas_call(
        kernel,
        out_shape=jax.ShapeDtypeStruct((B, D), t_x.dtype),
        grid_spec=pltpu.PrefetchScalarGridSpec(
            num_scalar_prefetch=1,
            grid=grid,
            in_specs=[pl.BlockSpec((bt, L, D), lambda g, idx_ref: (g, 0, 0))],
            out_specs=pl.BlockSpec((bt, D), lambda g, idx_ref: (g, 0)),
        ),
        compiler_params=pltpu.CompilerParams(
            dimension_semantics=("parallel",),
        ),
    )(idx, t_x)


def _check(key, B, L, D):
    k1, k2 = jax.random.split(key)
    t_x = jax.random.normal(k1, (B, L, D), dtype=jnp.float32)
    text = jax.random.randint(k2, (B, L), minval=0, maxval=1000, dtype=jnp.int32)

    out = jax.block_until_ready(text_prompt_forward(t_x, text))

    ref = t_x[jnp.arange(B), jnp.argmax(text, axis=-1)]
    assert out.shape == (B, D), (out.shape, (B, D))
    assert jnp.allclose(out, ref), f"mismatch vs reference gather for B={B}, L={L}, D={D}"


if __name__ == "__main__":
    key = jax.random.PRNGKey(0)
    keys = jax.random.split(key, 4)

    # Shapes implied by the module: [B, L, D] features + [B, L] token ids.
    _check(keys[0], B=2, L=8, D=32)      # tiny rows -> VMEM fallback path
    _check(keys[1], B=16, L=77, D=512)   # CLIP-ish case -> DMA path, bt=8, grid=2
    _check(keys[2], B=13, L=16, D=128)   # DMA path, partial last batch tile
    _check(keys[3], B=40, L=16, D=256)   # DMA path, bt=24, grid=2, clamped tail

    print("KERNEL_OK")
</pallas_src>

<mosaic_0001>
module attributes {stable_mosaic.version = 11 : i64} {
  func.func @_gather_vmem_kernel(%arg0: i32, %arg1: memref<2xi32, #tpu.memory_space<smem>>, %arg2: memref<2x8x32xf32, #tpu.memory_space<vmem>>, %arg3: memref<2x32xf32, #tpu.memory_space<vmem>>) attributes {dimension_semantics = [#tpu.dimension_semantics<parallel>], iteration_bounds = array<i64: 1>, scalar_prefetch = 1 : i64, scratch_operands = 0 : i64, tpu.core_type = #tpu.core_type<tc>, window_params = [{transform_indices = @transform_0, window_bounds = array<i64: 2, 8, 32>}, {transform_indices = @transform_1, window_bounds = array<i64: 2, 32>}]} {
    %c2_i32 = arith.constant 2 : i32
    %0 = arith.muli %arg0, %c2_i32 : i32
    %c0_i32 = arith.constant 0 : i32
    %1 = arith.addi %0, %c0_i32 : i32
    %c1_i32 = arith.constant 1 : i32
    %2 = arith.minsi %1, %c1_i32 : i32
    %3 = arith.index_cast %2 : i32 to index
    %4 = memref.load %arg1[%3] : memref<2xi32, #tpu.memory_space<smem>>
    %c0 = arith.constant 0 : index
    %5 = arith.index_cast %4 : i32 to index
    %c0_0 = arith.constant 0 : index
    %6 = vector.load %arg2[%c0, %5, %c0_0] : memref<2x8x32xf32, #tpu.memory_space<vmem>>, vector<1x1x32xf32>
    %7 = vector.shape_cast %6 : vector<1x1x32xf32> to vector<1x32xf32>
    %c0_1 = arith.constant 0 : index
    %c0_2 = arith.constant 0 : index
    %8 = vector.load %arg3[%c0_1, %c0_2] : memref<2x32xf32, #tpu.memory_space<vmem>>, vector<1x32xf32>
    tpu.vector_store %arg3[%c0_1, %c0_2], %7 {strides = array<i32>} : memref<2x32xf32, #tpu.memory_space<vmem>>, vector<1x32xf32>,
    %c1_i32_3 = arith.constant 1 : i32
    %9 = arith.addi %0, %c1_i32_3 : i32
    %c1_i32_4 = arith.constant 1 : i32
    %10 = arith.minsi %9, %c1_i32_4 : i32
    %11 = arith.index_cast %10 : i32 to index
    %12 = memref.load %arg1[%11] : memref<2xi32, #tpu.memory_space<smem>>
    %c1 = arith.constant 1 : index
    %13 = arith.index_cast %12 : i32 to index
    %c0_5 = arith.constant 0 : index
    %14 = vector.load %arg2[%c1, %13, %c0_5] : memref<2x8x32xf32, #tpu.memory_space<vmem>>, vector<1x1x32xf32>
    %15 = vector.shape_cast %14 : vector<1x1x32xf32> to vector<1x32xf32>
    %c1_6 = arith.constant 1 : index
    %c0_7 = arith.constant 0 : index
    %16 = vector.load %arg3[%c1_6, %c0_7] : memref<2x32xf32, #tpu.memory_space<vmem>>, vector<1x32xf32>
    tpu.vector_store %arg3[%c1_6, %c0_7], %15 {strides = array<i32>} : memref<2x32xf32, #tpu.memory_space<vmem>>, vector<1x32xf32>,
    return
  }
  func.func @transform_0(%arg0: i32, %arg1: memref<2xi32, #tpu.memory_space<smem>>) -> (i32, i32, i32) {
    %c0_i32 = arith.constant 0 : i32
    %c0_i32_0 = arith.constant 0 : i32
    %c0_i32_1 = arith.constant 0 : i32
    return %arg0, %c0_i32, %c0_i32_0 : i32, i32, i32
  }
  func.func @transform_1(%arg0: i32, %arg1: memref<2xi32, #tpu.memory_space<smem>>) -> (i32, i32) {
    %c0_i32 = arith.constant 0 : i32
    %c0_i32_0 = arith.constant 0 : i32
    return %arg0, %c0_i32 : i32, i32
  }
}

</mosaic_0001>

<bundles_post_ra>
// kernel: tpu_custom_call.1
= control target key start
LH: loop header
LB: loop body
LE: loop exit
PB: predicated region body
PF: predicated region fallthrough
CT: control target
= control target key end

     0   :  { %s143_s12 = smov [#allocation3]   ;;  %s172_s0 = inlined_call_operand.hbm [shape: s32[2], index: 0, kind: input, shape index: {}]   ;;  %s173_s1 = inlined_call_operand.hbm [shape: f32[2,8,32], index: 1, kind: input, shape index: {}]   ;;  %s174_s2 = inlined_call_operand.hbm [shape: f32[2,32], index: 2, kind: output, shape index: {}]  }
   0x1   :  { %s8_s11 = sshll.u32 %s172_s0, 4  ;;  %s9_s11 = int_to_ptr.hbm [resolvable:$true] %s8_s11 }
   0x2   :  { %11 = dma.hbm_to_smem %s9_s11, 16, %s143_s12, [#allocation2] }
   0x3   :  { %137 = dma.done.wait [#allocation2], 16 }
   0x4   :  { %138 = vsyncadd [#allocation2], 4294967280 }
   0x5   :  { %14 = sfence }
   0x6   :  { %15 = vsyncpa [#allocation5], 0 }
   0x7   :  { %16 = vsyncpa [#allocation6], 0  ;;  %s21_s15 = sshll.u32 %s173_s1, 4  ;;  %s144_s16 = smov [#allocation4]   ;;  %s22_s15 = int_to_ptr.hbm [resolvable:$true] %s21_s15 }
   0x8   :  { %s23_s17 = sshll.u32 %s144_s16, 4  ;;  %s145_s18 = smov 128   ;;  %s24_s17 = int_to_ptr.vmem [resolvable:$true] %s23_s17 }
   0x9   :  { %s146_s19 = smov 8  }
   0xa   :  { %29 = dma.hbm_to_vmem [thread:$0]  %s22_s15, 256, %s24_s17, [#allocation5], %s145_s18, %s145_s18, %s146_s19  }
   0xb   :  { %139 = dma.done.wait [#allocation5], 256  }
   0xc   :  { %140 = vsyncadd [#allocation5], 4294967040  ;;  %s37_s0 = sld [smem:[#allocation3]]  ;;  %s147_s21 = smov [#allocation7]   ;;  %vm40_vm0 = vcmask 253952  }
   0xd   :  { %s70_s20 = sld [smem:[#allocation3 + $0x1]]  ;;  %s55_s22 = sshll.u32 %s147_s21, 4  ;;  %s56_s22 = int_to_ptr.vmem [resolvable:$true] %s55_s22 }
   0xe   :  { %s57_s25 = sshll.u32 %s174_s2, 4  ;;  %s58_s25 = int_to_ptr.hbm [resolvable:$true] %s57_s25 }
  0x12   :  { %s38_s1 = scalar_lea.vmem [#allocation4], %s37_s0 }
  0x13   :  { %v39_v0 = vld [vmem:[%s38_s1] sm:$0x1]  ;;  %s68_s26 = scalar_lea.vmem [#allocation4], %s70_s20 }
  0x14   :  { %41 = vst.msk [vmem:[#allocation7] sm:$0x1] %vm40_vm0, %v39_v0  ;;  %v71_v1 = vld [vmem:[%s68_s26 + $0x8] sm:$0x1] }
  0x15   :  { %49 = vst.msk [vmem:[#allocation7 + $0x1] sm:$0x1] %vm40_vm0, %v71_v1 }
  0x16   :  { %60 = dma.vmem_to_hbm [thread:$0]  %s56_s22, 32, %s58_s25, [#allocation6]  }
  0x17   :  { %141 = dma.done.wait [#allocation6], 32  }
  0x18   :  { %142 = vsyncadd [#allocation6], 4294967264 }
  0x19   :  { %65 = vsyncpa [#allocation5], 1 }
  0x1a   :  { %66 = vsyncpa [#allocation6], 1 }

</bundles_post_ra>
